<compile_context>
chip_gen: v6e
topology: v6e:2x2x1
jax: 0.10.0
libtpu: 0.0.40
codegen_flags: <defaults>
</compile_context>

<pallas_src>
import jax
import jax.numpy as jnp
from jax.experimental import pallas as pl
from jax.experimental.pallas import tpu as pltpu

_SUBLANE = 8
_LANE = 128
_VMEM_BUDGET = 16 * 1024 * 1024     # per-step tile footprint cap (bytes)
_TARGET_ROWS = 8192                 # ~1 MiB of hidden writeback per grid step (H=32)


def _round_up(x, m):
    return ((x + m - 1) // m) * m


def _pick_tiles(B, T, k, S, H, F, G, hidden_bytes,
                budget_bytes=_VMEM_BUDGET, target_rows=_TARGET_ROWS):
    """Choose (bb, B_pad, ttk, Tk_pad, per-step VMEM footprint bytes).

    Time is processed in groups of k consecutive timesteps (k*H == 128 lane
    packing); `ttk` is the number of groups per block and `Tk_pad` the padded
    group count.  The per-step VMEM footprint (including minor-dim lane/sublane
    padding and x2 double buffering) is kept under `budget_bytes`.
    """
    kS, kH = k * S, k * H
    # sublane alignment for the time-group axis (hidden may be sub-32-bit)
    t_align = _SUBLANE * max(1, 4 // max(1, hidden_bytes))

    Tk = pl.cdiv(T, k)                       # number of k-timestep groups
    Tk_full = _round_up(Tk, t_align)

    p8 = lambda v: _round_up(v, _SUBLANE)
    p128 = lambda v: _round_up(v, _LANE)

    def step_bytes(bb_, ttk_):
        ts_b = bb_ * p8(ttk_) * p128(kS) * 4
        hid_b = bb_ * p8(ttk_) * p128(kH) * hidden_bytes
        rsk_b = bb_ * p8(ttk_) * p128(k) * 4
        stat_b = p8(bb_) * (p128(F) + p128(G)) * 4
        w_b = (p8(F) + p8(G) + p8(kS) + p8(1)) * p128(kH) * 4 \
            + p8(kH) * p128(k) * 4
        return 2 * (ts_b + hid_b + rsk_b + stat_b + w_b)   # x2: double buffering

    # --- batch tile ---------------------------------------------------------
    bb = B if B <= _SUBLANE else _SUBLANE

    # --- time tile: ~target_rows timesteps per step, VMEM-budget capped ------
    ttk = min(Tk_full,
              _round_up(max(1, target_rows // max(1, bb * k)), t_align))
    while ttk > t_align and step_bytes(bb, ttk) > budget_bytes:
        ttk = max(t_align, _round_up(ttk // 2, t_align))

    # --- grow the batch tile for tiny-T / large-B shapes ---------------------
    if B > _SUBLANE:
        while (ttk >= Tk_full
               and bb < 64
               and bb * ttk * k < target_rows
               and bb + _SUBLANE <= _round_up(B, _SUBLANE)
               and step_bytes(bb + _SUBLANE, ttk) <= budget_bytes
               and _round_up(B, bb + _SUBLANE) // (bb + _SUBLANE) >= 4):
            bb += _SUBLANE
    B_pad = B if B <= _SUBLANE else _round_up(B, bb)

    # --- expose >= 4 grid steps when there is enough work (v7x: 2 TCs) -------
    if B_pad * Tk_full * k >= 4096:
        while ((B_pad // bb) * (_round_up(Tk, ttk) // ttk) < 4
               and ttk > 4 * t_align):
            ttk = max(4 * t_align, _round_up(ttk // 2, t_align))

    Tk_pad = _round_up(Tk, ttk)
    return bb, B_pad, ttk, Tk_pad, step_bytes(bb, ttk)


def risk_kernel(flat_ref, graph_ref, ts_ref, w1f_ref, w1g_ref, w1t_ref,
                b1_ref, w2_ref, b2_ref, risk_ref, hidden_ref, fg_ref):
    bb = ts_ref.shape[0]

    # Static (flat + graph) contribution + bias: computed once per grid step
    # (flat/graph keep the same block index across the time axis, so they are
    # read from HBM once per batch block) and parked in a tiny VMEM scratch so
    # the per-row loop can index it dynamically.
    fg = jnp.dot(flat_ref[...], w1f_ref[...], preferred_element_type=jnp.float32)
    fg = fg + jnp.dot(graph_ref[...], w1g_ref[...], preferred_element_type=jnp.float32)
    fg_ref[...] = (fg + b1_ref[...])[:, None, :]            # (bb, 1, k*H)

    w1t = w1t_ref[...]                                       # (k*S, k*H) block-diag
    w2 = w2_ref[...]                                         # (k*H, k)   block-diag
    b2 = b2_ref[0]

    def body(i, carry):
        # One batch row per iteration: the fc1 matmul, the lane-dense hidden
        # store and the fc2 reduce all happen while h is live in vregs, so h
        # never round-trips VMEM and no in-kernel reshape is needed.
        x = ts_ref[i]                                        # (ttk, k*S)
        h = jnp.dot(x, w1t, preferred_element_type=jnp.float32) + fg_ref[i]
        h = jnp.maximum(h, 0.0)                              # ReLU, (ttk, k*H)
        hidden_ref[i] = h.astype(hidden_ref.dtype)           # k*H == 128: full-lane store
        logit = jnp.dot(h, w2, preferred_element_type=jnp.float32) + b2
        risk_ref[i] = jax.nn.sigmoid(logit).astype(risk_ref.dtype)
        return carry

    jax.lax.fori_loop(0, bb, body, 0, unroll=bool(bb <= _SUBLANE))


def risk_predictor_forward(flat, graph, ts, w1, b1, w2, b2, *,
                           hidden_dtype=jnp.float32):
    """Mirrors RiskPredictor.forward.

    flat:  (B, F)      graph: (B, G)      ts: (B, T, S)
    w1:    (D, H) with D = F+G+S   (transposed vs torch's (H, D) weight)
    b1:    (H,)   w2: (H, 1)   b2: (1,)
    Returns (risk (B, T) float32, hidden (B, T, H) hidden_dtype).

    hidden_dtype=jnp.bfloat16 is strongly recommended when downstream code
    tolerates it: the hidden writeback is the dominant HBM stream and bf16
    halves it; risk stays float32-accurate either way.
    """
    B, T, S = ts.shape
    F = flat.shape[1]
    G = graph.shape[1]
    D = F + G + S
    H = w1.shape[1]
    assert w1.shape[0] == D, "w1 must be (flat_dim+graph_dim+ts_dim, hidden_dim)"

    # Lane-packing factor: k consecutive timesteps share one 128-lane row so
    # the hidden writeback is lane-dense (k*H == 128) even for small H.
    k = _LANE // H if (H < _LANE and _LANE % H == 0) else 1
    kS, kH = k * S, k * H

    hidden_bytes = jnp.dtype(hidden_dtype).itemsize
    bb, B_pad, ttk, Tk_pad, footprint = _pick_tiles(
        B, T, k, S, H, F, G, hidden_bytes)
    n_b, n_t = B_pad // bb, Tk_pad // ttk
    T_pad = Tk_pad * k

    f32 = jnp.float32
    flat = flat.astype(f32)
    graph = graph.astype(f32)
    ts = ts.astype(f32)
    w1 = w1.astype(f32)
    w1_f, w1_g, w1_t = w1[:F], w1[F:F + G], w1[F + G:]
    eye_k = jnp.eye(k, dtype=f32)
    # Static-feature weights / bias repeat their H columns k times (one copy per
    # packed timestep); the ts weight and w2 become block-diagonal so each packed
    # timestep only sees its own S inputs / writes its own H hidden lanes.
    w1_f_p = jnp.tile(w1_f, (1, k))                          # (F, kH)
    w1_g_p = jnp.tile(w1_g, (1, k))                          # (G, kH)
    b1_p = jnp.tile(b1.reshape(1, H).astype(f32), (1, k))    # (1, kH)
    w1_t_p = jnp.kron(eye_k, w1_t)                           # (kS, kH) block-diag
    w2_bd = jnp.kron(eye_k, w2.reshape(H, 1).astype(f32))    # (kH, k)  block-diag
    b2_1d = b2.reshape(1).astype(f32)                        # scalar -> SMEM

    # Zero-pad batch / time to the tile grid (cropped after the call).
    if B_pad != B:
        pb = B_pad - B
        flat = jnp.pad(flat, ((0, pb), (0, 0)))
        graph = jnp.pad(graph, ((0, pb), (0, 0)))
        ts = jnp.pad(ts, ((0, pb), (0, 0), (0, 0)))
    if T_pad != T:
        ts = jnp.pad(ts, ((0, 0), (0, T_pad - T), (0, 0)))
    # (B_pad, T_pad, S) -> (B_pad, Tk_pad, k*S): contiguous, free in HBM.
    ts_packed = ts.reshape(B_pad, Tk_pad, kS)

    vmem_limit = int(min(48 * 1024 * 1024,
                         max(32 * 1024 * 1024, 2 * footprint)))

    risk_p, hidden_p = pl.pallas_call(
        risk_kernel,
        out_shape=(
            jax.ShapeDtypeStruct((B_pad, Tk_pad, k), jnp.float32),
            jax.ShapeDtypeStruct((B_pad, Tk_pad, kH), hidden_dtype),
        ),
        grid_spec=pltpu.PrefetchScalarGridSpec(
            num_scalar_prefetch=0,
            grid=(n_b, n_t),
            in_specs=[
                pl.BlockSpec((bb, F), lambda b, t: (b, 0)),           # flat   (per batch)
                pl.BlockSpec((bb, G), lambda b, t: (b, 0)),           # graph  (per batch)
                pl.BlockSpec((bb, ttk, kS), lambda b, t: (b, t, 0)),  # ts (lane-packed)
                pl.BlockSpec((F, kH), lambda b, t: (0, 0)),           # W1_flat (tiled)
                pl.BlockSpec((G, kH), lambda b, t: (0, 0)),           # W1_graph (tiled)
                pl.BlockSpec((kS, kH), lambda b, t: (0, 0)),          # W1_ts (block-diag)
                pl.BlockSpec((1, kH), lambda b, t: (0, 0)),           # b1 (tiled)
                pl.BlockSpec((kH, k), lambda b, t: (0, 0)),           # w2 (block-diag)
                pl.BlockSpec(memory_space=pltpu.MemorySpace.SMEM),    # b2 scalar
            ],
            out_specs=[
                pl.BlockSpec((bb, ttk, k), lambda b, t: (b, t, 0)),   # risk
                pl.BlockSpec((bb, ttk, kH), lambda b, t: (b, t, 0)),  # hidden (lane-dense)
            ],
            scratch_shapes=[pltpu.VMEM((bb, 1, kH), jnp.float32)],    # fc1 static part
        ),
        compiler_params=pltpu.CompilerParams(
            dimension_semantics=("parallel", "parallel"),
            vmem_limit_bytes=vmem_limit),
    )(flat, graph, ts_packed, w1_f_p, w1_g_p, w1_t_p, b1_p, w2_bd, b2_1d)

    # (B_pad, Tk_pad, k[*H]) is memory-identical to (B_pad, T_pad[, H]).
    risk = risk_p.reshape(B_pad, T_pad)[:B, :T]
    hidden = hidden_p.reshape(B_pad, T_pad, H)[:B, :T]
    return risk, hidden


def init_params(key, flat_dim, graph_dim, ts_dim, hidden_dim):
    """Matches nn.Linear's default uniform(-1/sqrt(fan_in), 1/sqrt(fan_in)) init."""
    D = flat_dim + graph_dim + ts_dim
    k1, k2, k3, k4 = jax.random.split(key, 4)
    bound1 = 1.0 / jnp.sqrt(D)
    bound2 = 1.0 / jnp.sqrt(hidden_dim)
    w1 = jax.random.uniform(k1, (D, hidden_dim), jnp.float32, -bound1, bound1)
    b1 = jax.random.uniform(k2, (hidden_dim,), jnp.float32, -bound1, bound1)
    w2 = jax.random.uniform(k3, (hidden_dim, 1), jnp.float32, -bound2, bound2)
    b2 = jax.random.uniform(k4, (1,), jnp.float32, -bound2, bound2)
    return w1, b1, w2, b2


def reference_forward(flat, graph, ts, w1, b1, w2, b2):
    B, T, _ = ts.shape
    flat_exp = jnp.broadcast_to(flat[:, None, :], (B, T, flat.shape[1]))
    graph_exp = jnp.broadcast_to(graph[:, None, :], (B, T, graph.shape[1]))
    x = jnp.concatenate([flat_exp, graph_exp, ts], axis=2)
    h = jax.nn.relu(x @ w1 + b1)
    y = jax.nn.sigmoid(h @ w2 + b2)[..., 0]
    return y, h


if __name__ == "__main__":
    def run_case(key, B, T, flat_dim, graph_dim, ts_dim, hidden_dim,
                 hidden_dtype=jnp.float32):
        kf, kg, kt, kp = jax.random.split(key, 4)
        flat = jax.random.normal(kf, (B, flat_dim), jnp.float32)
        graph = jax.random.normal(kg, (B, graph_dim), jnp.float32)
        ts = jax.random.normal(kt, (B, T, ts_dim), jnp.float32)
        w1, b1, w2, b2 = init_params(kp, flat_dim, graph_dim, ts_dim, hidden_dim)

        risk, hidden = risk_predictor_forward(
            flat, graph, ts, w1, b1, w2, b2, hidden_dtype=hidden_dtype)
        jax.block_until_ready((risk, hidden))

        risk_ref, hidden_ref = reference_forward(flat, graph, ts, w1, b1, w2, b2)
        assert risk.shape == (B, T)
        assert hidden.shape == (B, T, hidden_dim)
        assert risk.dtype == jnp.float32
        assert hidden.dtype == jnp.dtype(hidden_dtype)
        assert jnp.allclose(risk, risk_ref, atol=1e-5, rtol=1e-5)
        if jnp.dtype(hidden_dtype) == jnp.dtype(jnp.float32):
            assert jnp.allclose(hidden, hidden_ref, atol=1e-5, rtol=1e-5)
        else:
            assert jnp.allclose(hidden.astype(jnp.float32), hidden_ref,
                                atol=2e-2, rtol=2e-2)

    key = jax.random.PRNGKey(0)
    k1, k2, k3, k4 = jax.random.split(key, 4)
    # Small shapes consistent with the module's forward.
    run_case(k1, B=2, T=8, flat_dim=8, graph_dim=8, ts_dim=16, hidden_dim=32)
    # Exercises batch/time zero-padding and a 2-step batch grid.
    run_case(k2, B=12, T=12, flat_dim=8, graph_dim=8, ts_dim=16, hidden_dim=32)
    # Exercises a multi-step time grid (>=4 steps for megacore) + time crop.
    run_case(k3, B=4, T=1000, flat_dim=8, graph_dim=8, ts_dim=16, hidden_dim=32)
    # bf16 hidden writeback (recommended bandwidth mode); risk stays f32-exact.
    run_case(k4, B=12, T=12, flat_dim=8, graph_dim=8, ts_dim=16, hidden_dim=32,
             hidden_dtype=jnp.bfloat16)

    print("KERNEL_OK")
</pallas_src>

<mosaic_0001>
module attributes {stable_mosaic.version = 11 : i64} {
  func.func @risk_kernel(%arg0: i32, %arg1: i32, %arg2: memref<2x8xf32, #tpu.memory_space<vmem>>, %arg3: memref<2x8xf32, #tpu.memory_space<vmem>>, %arg4: memref<2x8x64xf32, #tpu.memory_space<vmem>>, %arg5: memref<8x128xf32, #tpu.memory_space<vmem>>, %arg6: memref<8x128xf32, #tpu.memory_space<vmem>>, %arg7: memref<64x128xf32, #tpu.memory_space<vmem>>, %arg8: memref<1x128xf32, #tpu.memory_space<vmem>>, %arg9: memref<128x4xf32, #tpu.memory_space<vmem>>, %arg10: memref<1xf32, #tpu.memory_space<smem>>, %arg11: memref<2x8x4xf32, #tpu.memory_space<vmem>>, %arg12: memref<2x8x128xf32, #tpu.memory_space<vmem>>, %arg13: memref<2x1x128xf32, #tpu.memory_space<vmem>>) attributes {dimension_semantics = [#tpu.dimension_semantics<parallel>, #tpu.dimension_semantics<parallel>], iteration_bounds = array<i64: 1, 1>, scalar_prefetch = 0 : i64, scratch_operands = 1 : i64, tpu.core_type = #tpu.core_type<tc>, window_params = [{transform_indices = @transform_0, window_bounds = array<i64: 2, 8>}, {transform_indices = @transform_1, window_bounds = array<i64: 2, 8>}, {transform_indices = @transform_2, window_bounds = array<i64: 2, 8, 64>}, {pipeline_mode = #tpu.pipeline_mode<synchronous>, transform_indices = @transform_3, window_bounds = array<i64: 8, 128>}, {pipeline_mode = #tpu.pipeline_mode<synchronous>, transform_indices = @transform_4, window_bounds = array<i64: 8, 128>}, {pipeline_mode = #tpu.pipeline_mode<synchronous>, transform_indices = @transform_5, window_bounds = array<i64: 64, 128>}, {pipeline_mode = #tpu.pipeline_mode<synchronous>, transform_indices = @transform_6, window_bounds = array<i64: 1, 128>}, {pipeline_mode = #tpu.pipeline_mode<synchronous>, transform_indices = @transform_7, window_bounds = array<i64: 128, 4>}, {transform_indices = @transform_8, window_bounds = array<i64: 1>}, {transform_indices = @transform_9, window_bounds = array<i64: 2, 8, 4>}, {transform_indices = @transform_10, window_bounds = array<i64: 2, 8, 128>}]} {
    %c0 = arith.constant 0 : index
    %c0_0 = arith.constant 0 : index
    %0 = vector.load %arg2[%c0, %c0_0] : memref<2x8xf32, #tpu.memory_space<vmem>>, vector<2x8xf32>
    %c0_1 = arith.constant 0 : index
    %c0_2 = arith.constant 0 : index
    %1 = vector.load %arg5[%c0_1, %c0_2] : memref<8x128xf32, #tpu.memory_space<vmem>>, vector<8x128xf32>
    %cst = arith.constant dense<0.000000e+00> : vector<2x128xf32>
    %2 = tpu.matmul %0, %1, %cst {dimension_numbers = #tpu.dot_dimension_numbers<[1], [0], [0], [1], [0, 0, 1, 1], [], []>} : vector<2x8xf32>, vector<8x128xf32>, vector<2x128xf32> -> vector<2x128xf32>
    %c0_3 = arith.constant 0 : index
    %c0_4 = arith.constant 0 : index
    %3 = vector.load %arg3[%c0_3, %c0_4] : memref<2x8xf32, #tpu.memory_space<vmem>>, vector<2x8xf32>
    %c0_5 = arith.constant 0 : index
    %c0_6 = arith.constant 0 : index
    %4 = vector.load %arg6[%c0_5, %c0_6] : memref<8x128xf32, #tpu.memory_space<vmem>>, vector<8x128xf32>
    %cst_7 = arith.constant dense<0.000000e+00> : vector<2x128xf32>
    %5 = tpu.matmul %3, %4, %cst_7 {dimension_numbers = #tpu.dot_dimension_numbers<[1], [0], [0], [1], [0, 0, 1, 1], [], []>} : vector<2x8xf32>, vector<8x128xf32>, vector<2x128xf32> -> vector<2x128xf32>
    %6 = arith.addf %2, %5 : vector<2x128xf32>
    %c0_8 = arith.constant 0 : index
    %c0_9 = arith.constant 0 : index
    %7 = vector.load %arg8[%c0_8, %c0_9] : memref<1x128xf32, #tpu.memory_space<vmem>>, vector<1x128xf32>
    %8 = vector.broadcast %7 : vector<1x128xf32> to vector<2x128xf32>
    %9 = arith.addf %6, %8 : vector<2x128xf32>
    %10 = vector.shape_cast %9 : vector<2x128xf32> to vector<2x1x128xf32>
    %c0_10 = arith.constant 0 : index
    %c0_11 = arith.constant 0 : index
    %c0_12 = arith.constant 0 : index
    %11 = vector.load %arg13[%c0_10, %c0_11, %c0_12] : memref<2x1x128xf32, #tpu.memory_space<vmem>>, vector<2x1x128xf32>
    tpu.vector_store %arg13[%c0_10, %c0_11, %c0_12], %10 {strides = array<i32>} : memref<2x1x128xf32, #tpu.memory_space<vmem>>, vector<2x1x128xf32>,
    %c0_13 = arith.constant 0 : index
    %c0_14 = arith.constant 0 : index
    %12 = vector.load %arg7[%c0_13, %c0_14] : memref<64x128xf32, #tpu.memory_space<vmem>>, vector<64x128xf32>
    %c0_15 = arith.constant 0 : index
    %c0_16 = arith.constant 0 : index
    %13 = vector.load %arg9[%c0_15, %c0_16] : memref<128x4xf32, #tpu.memory_space<vmem>>, vector<128x4xf32>
    %c0_17 = arith.constant 0 : index
    %14 = memref.load %arg10[%c0_17] : memref<1xf32, #tpu.memory_space<smem>>
    %c0_i32 = arith.constant 0 : i32
    %15 = arith.index_cast %c0_i32 : i32 to index
    %c0_18 = arith.constant 0 : index
    %c0_19 = arith.constant 0 : index
    %16 = vector.load %arg4[%15, %c0_18, %c0_19] : memref<2x8x64xf32, #tpu.memory_space<vmem>>, vector<1x8x64xf32>
    %17 = vector.shape_cast %16 : vector<1x8x64xf32> to vector<8x64xf32>
    %cst_20 = arith.constant dense<0.000000e+00> : vector<8x128xf32>
    %18 = tpu.matmul %17, %12, %cst_20 {dimension_numbers = #tpu.dot_dimension_numbers<[1], [0], [0], [1], [0, 0, 1, 1], [], []>} : vector<8x64xf32>, vector<64x128xf32>, vector<8x128xf32> -> vector<8x128xf32>
    %19 = arith.index_cast %c0_i32 : i32 to index
    %c0_21 = arith.constant 0 : index
    %c0_22 = arith.constant 0 : index
    %20 = vector.load %arg13[%19, %c0_21, %c0_22] : memref<2x1x128xf32, #tpu.memory_space<vmem>>, vector<1x1x128xf32>
    %21 = vector.shape_cast %20 : vector<1x1x128xf32> to vector<1x128xf32>
    %22 = vector.broadcast %21 : vector<1x128xf32> to vector<8x128xf32>
    %23 = arith.addf %18, %22 : vector<8x128xf32>
    %cst_23 = arith.constant 0.000000e+00 : f32
    %24 = vector.broadcast %cst_23 : f32 to vector<8x128xf32>
    %25 = arith.maximumf %23, %24 : vector<8x128xf32>
    %26 = arith.index_cast %c0_i32 : i32 to index
    %c0_24 = arith.constant 0 : index
    %c0_25 = arith.constant 0 : index
    %27 = vector.load %arg12[%26, %c0_24, %c0_25] : memref<2x8x128xf32, #tpu.memory_space<vmem>>, vector<1x8x128xf32>
    %28 = vector.shape_cast %27 : vector<1x8x128xf32> to vector<8x128xf32>
    %29 = vector.shape_cast %25 : vector<8x128xf32> to vector<1x8x128xf32>
    tpu.vector_store %arg12[%26, %c0_24, %c0_25], %29 {strides = array<i32>} : memref<2x8x128xf32, #tpu.memory_space<vmem>>, vector<1x8x128xf32>,
    %cst_26 = arith.constant dense<0.000000e+00> : vector<8x4xf32>
    %30 = tpu.matmul %25, %13, %cst_26 {dimension_numbers = #tpu.dot_dimension_numbers<[1], [0], [0], [1], [0, 0, 1, 1], [], []>} : vector<8x128xf32>, vector<128x4xf32>, vector<8x4xf32> -> vector<8x4xf32>
    %31 = vector.broadcast %14 : f32 to vector<8x4xf32>
    %32 = arith.addf %30, %31 : vector<8x4xf32>
    %33 = arith.negf %32 : vector<8x4xf32>
    %34 = math.exp %33 : vector<8x4xf32>
    %cst_27 = arith.constant 1.000000e+00 : f32
    %35 = vector.broadcast %cst_27 : f32 to vector<8x4xf32>
    %36 = arith.addf %35, %34 : vector<8x4xf32>
    %37 = arith.divf %35, %36 : vector<8x4xf32>
    %38 = arith.index_cast %c0_i32 : i32 to index
    %c0_28 = arith.constant 0 : index
    %c0_29 = arith.constant 0 : index
    %39 = vector.load %arg11[%38, %c0_28, %c0_29] : memref<2x8x4xf32, #tpu.memory_space<vmem>>, vector<1x8x4xf32>
    %40 = vector.shape_cast %39 : vector<1x8x4xf32> to vector<8x4xf32>
    %41 = vector.shape_cast %37 : vector<8x4xf32> to vector<1x8x4xf32>
    tpu.vector_store %arg11[%38, %c0_28, %c0_29], %41 {strides = array<i32>} : memref<2x8x4xf32, #tpu.memory_space<vmem>>, vector<1x8x4xf32>,
    %c1_i32 = arith.constant 1 : i32
    %42 = arith.index_cast %c1_i32 : i32 to index
    %c0_30 = arith.constant 0 : index
    %c0_31 = arith.constant 0 : index
    %43 = vector.load %arg4[%42, %c0_30, %c0_31] : memref<2x8x64xf32, #tpu.memory_space<vmem>>, vector<1x8x64xf32>
    %44 = vector.shape_cast %43 : vector<1x8x64xf32> to vector<8x64xf32>
    %cst_32 = arith.constant dense<0.000000e+00> : vector<8x128xf32>
    %45 = tpu.matmul %44, %12, %cst_32 {dimension_numbers = #tpu.dot_dimension_numbers<[1], [0], [0], [1], [0, 0, 1, 1], [], []>} : vector<8x64xf32>, vector<64x128xf32>, vector<8x128xf32> -> vector<8x128xf32>
    %46 = arith.index_cast %c1_i32 : i32 to index
    %c0_33 = arith.constant 0 : index
    %c0_34 = arith.constant 0 : index
    %47 = vector.load %arg13[%46, %c0_33, %c0_34] : memref<2x1x128xf32, #tpu.memory_space<vmem>>, vector<1x1x128xf32>
    %48 = vector.shape_cast %47 : vector<1x1x128xf32> to vector<1x128xf32>
    %49 = vector.broadcast %48 : vector<1x128xf32> to vector<8x128xf32>
    %50 = arith.addf %45, %49 : vector<8x128xf32>
    %cst_35 = arith.constant 0.000000e+00 : f32
    %51 = vector.broadcast %cst_35 : f32 to vector<8x128xf32>
    %52 = arith.maximumf %50, %51 : vector<8x128xf32>
    %53 = arith.index_cast %c1_i32 : i32 to index
    %c0_36 = arith.constant 0 : index
    %c0_37 = arith.constant 0 : index
    %54 = vector.load %arg12[%53, %c0_36, %c0_37] : memref<2x8x128xf32, #tpu.memory_space<vmem>>, vector<1x8x128xf32>
    %55 = vector.shape_cast %54 : vector<1x8x128xf32> to vector<8x128xf32>
    %56 = vector.shape_cast %52 : vector<8x128xf32> to vector<1x8x128xf32>
    tpu.vector_store %arg12[%53, %c0_36, %c0_37], %56 {strides = array<i32>} : memref<2x8x128xf32, #tpu.memory_space<vmem>>, vector<1x8x128xf32>,
    %cst_38 = arith.constant dense<0.000000e+00> : vector<8x4xf32>
    %57 = tpu.matmul %52, %13, %cst_38 {dimension_numbers = #tpu.dot_dimension_numbers<[1], [0], [0], [1], [0, 0, 1, 1], [], []>} : vector<8x128xf32>, vector<128x4xf32>, vector<8x4xf32> -> vector<8x4xf32>
    %58 = vector.broadcast %14 : f32 to vector<8x4xf32>
    %59 = arith.addf %57, %58 : vector<8x4xf32>
    %60 = arith.negf %59 : vector<8x4xf32>
    %61 = math.exp %60 : vector<8x4xf32>
    %cst_39 = arith.constant 1.000000e+00 : f32
    %62 = vector.broadcast %cst_39 : f32 to vector<8x4xf32>
    %63 = arith.addf %62, %61 : vector<8x4xf32>
    %64 = arith.divf %62, %63 : vector<8x4xf32>
    %65 = arith.index_cast %c1_i32 : i32 to index
    %c0_40 = arith.constant 0 : index
    %c0_41 = arith.constant 0 : index
    %66 = vector.load %arg11[%65, %c0_40, %c0_41] : memref<2x8x4xf32, #tpu.memory_space<vmem>>, vector<1x8x4xf32>
    %67 = vector.shape_cast %66 : vector<1x8x4xf32> to vector<8x4xf32>
    %68 = vector.shape_cast %64 : vector<8x4xf32> to vector<1x8x4xf32>
    tpu.vector_store %arg11[%65, %c0_40, %c0_41], %68 {strides = array<i32>} : memref<2x8x4xf32, #tpu.memory_space<vmem>>, vector<1x8x4xf32>,
    %c2_i32 = arith.constant 2 : i32
    return
  }
  func.func @transform_0(%arg0: i32, %arg1: i32) -> (i32, i32) {
    %c0_i32 = arith.constant 0 : i32
    %c0_i32_0 = arith.constant 0 : i32
    return %arg0, %c0_i32 : i32, i32
  }
  func.func @transform_1(%arg0: i32, %arg1: i32) -> (i32, i32) {
    %c0_i32 = arith.constant 0 : i32
    %c0_i32_0 = arith.constant 0 : i32
    return %arg0, %c0_i32 : i32, i32
  }
  func.func @transform_2(%arg0: i32, %arg1: i32) -> (i32, i32, i32) {
    %c0_i32 = arith.constant 0 : i32
    %c0_i32_0 = arith.constant 0 : i32
    return %arg0, %arg1, %c0_i32 : i32, i32, i32
  }
  func.func @transform_3(%arg0: i32, %arg1: i32) -> (i32, i32) {
    %c0_i32 = arith.constant 0 : i32
    %c0_i32_0 = arith.constant 0 : i32
    %c0_i32_1 = arith.constant 0 : i32
    return %c0_i32, %c0_i32_0 : i32, i32
  }
  func.func @transform_4(%arg0: i32, %arg1: i32) -> (i32, i32) {
    %c0_i32 = arith.constant 0 : i32
    %c0_i32_0 = arith.constant 0 : i32
    %c0_i32_1 = arith.constant 0 : i32
    return %c0_i32, %c0_i32_0 : i32, i32
  }
  func.func @transform_5(%arg0: i32, %arg1: i32) -> (i32, i32) {
    %c0_i32 = arith.constant 0 : i32
    %c0_i32_0 = arith.constant 0 : i32
    %c0_i32_1 = arith.constant 0 : i32
    return %c0_i32, %c0_i32_0 : i32, i32
  }
  func.func @transform_6(%arg0: i32, %arg1: i32) -> (i32, i32) {
    %c0_i32 = arith.constant 0 : i32
    %c0_i32_0 = arith.constant 0 : i32
    %c0_i32_1 = arith.constant 0 : i32
    return %c0_i32, %c0_i32_0 : i32, i32
  }
  func.func @transform_7(%arg0: i32, %arg1: i32) -> (i32, i32) {
    %c0_i32 = arith.constant 0 : i32
    %c0_i32_0 = arith.constant 0 : i32
    %c0_i32_1 = arith.constant 0 : i32
    return %c0_i32, %c0_i32_0 : i32, i32
  }
  func.func @transform_8(%arg0: i32, %arg1: i32) -> i32 {
    %c0_i32 = arith.constant 0 : i32
    %c0_i32_0 = arith.constant 0 : i32
    return %c0_i32 : i32
  }
  func.func @transform_9(%arg0: i32, %arg1: i32) -> (i32, i32, i32) {
    %c0_i32 = arith.constant 0 : i32
    %c0_i32_0 = arith.constant 0 : i32
    return %arg0, %arg1, %c0_i32 : i32, i32, i32
  }
  func.func @transform_10(%arg0: i32, %arg1: i32) -> (i32, i32, i32) {
    %c0_i32 = arith.constant 0 : i32
    %c0_i32_0 = arith.constant 0 : i32
    return %arg0, %arg1, %c0_i32 : i32, i32, i32
  }
}

</mosaic_0001>

<bundles_post_ra>
// kernel: tpu_custom_call.1
= control target key start
LH: loop header
LB: loop body
LE: loop exit
PB: predicated region body
PF: predicated region fallthrough
CT: control target
= control target key end

     0   :  { %v817_v2 = vmov 0.0   ;;  %vm40_vm0 = vcmask 64512   ;;  %vm818_vm1 = vmmov 0   ;;  %s1045_s0 = inlined_call_operand.vmem [shape: f32[2,8], index: 0, kind: input, shape index: {}]   ;;  %s1046_s1 = inlined_call_operand.vmem [shape: f32[2,8], index: 1, kind: input, shape index: {}]   ;;  %s1047_s2 = inlined_call_operand.vmem [shape: f32[2,8,64], index: 2, kind: input, shape index: {}]   ;;  %s1048_s3 = inlined_call_operand.vmem [shape: f32[8,128], index: 3, kind: input, shape index: {}]   ;;  %s1049_s4 = inlined_call_operand.vmem [shape: f32[8,128], index: 4, kind: input, shape index: {}]   ;;  %s1050_s5 = inlined_call_operand.vmem [shape: f32[64,128], index: 5, kind: input, shape index: {}]   ;;  %s1051_s6 = inlined_call_operand.vmem [shape: f32[1,128], index: 6, kind: input, shape index: {}]   ;;  %s1052_s7 = inlined_call_operand.vmem [shape: f32[128,4], index: 7, kind: input, shape index: {}]   ;;  %s1053_s8 = inlined_call_operand.<no memory space> [shape: f32[1], index: 8, kind: input, shape index: {}]   ;;  %s1054_s9 = inlined_call_operand.vmem [shape: f32[2,8,4], index: 9, kind: output, shape index: {0}]   ;;  %s1055_s10 = inlined_call_operand.hbm [shape: f32[2,8,128], index: 10, kind: output, shape index: {1}]  }
   0x1   :  { %v39_v0 = vld [vmem:[%s1049_s4] sm:$0xff]  ;;  %663 = vmatprep.subr.mxu0 %v817_v2  ;;  %668 = vmatprep.subr.mxu1 %v817_v2  ;;  %v229_v5 = vld [vmem:[%s1050_s5 + $0x38] sm:$0xff]  ;;  %v228_v6 = vld [vmem:[%s1050_s5 + $0x30] sm:$0xff] }
   0x2   :  { %v37_v1 = vld [vmem:[%s1048_s3] sm:$0xff]  ;;  %664 = vmatpush3.msra.mxu0 %v39_v0  ;;  %665 = vmatprep.mubr.msk.f32.mxu0 %vm818_vm1, %v817_v2 }
   0x3   :  { %v38_v3 = vld [vmem:[%s1046_s1] sm:$0x3]  ;;  %669 = vmatpush3.msra.mxu1 %v37_v1  ;;  %670 = vmatprep.mubr.msk.f32.mxu1 %vm818_vm1, %v817_v2 }
   0x4   :  { %v36_v4 = vld [vmem:[%s1045_s0] sm:$0x3]  ;;  %666 = vmatmul.mubr.msk.f32.vlgmr.msra.gmra.mxu0 %vm40_vm0, %v38_v3  ;;  %673 = vmatprep.subr.mxu1 %v817_v2 }
   0x5   :  { %671 = vmatmul.mubr.msk.f32.vlgmr.msra.gmra.mxu1 %vm40_vm0, %v36_v4  ;;  %727 = vmatprep.subr.mxu0 %v817_v2 }
   0x6   :  { %674 = vmatpush3.msra.mxu1 %v229_v5  ;;  %728 = vmatpush3.msra.mxu0 %v229_v5 }
   0x7   :  { %17 = vsyncpa [#allocation5], 0  ;;  %675 = vmatprep.subr.mxu1 %v817_v2  ;;  %729 = vmatprep.subr.mxu0 %v817_v2  ;;  %v227_v7 = vld [vmem:[%s1050_s5 + $0x28] sm:$0xff]  ;;  %v226_v8 = vld [vmem:[%s1050_s5 + $0x20] sm:$0xff]  ;;  %vm255_vm2 = vcmask 523264   ;;  %v199_v33 = vlaneseq }
   0x8   :  { %676 = vmatpush3.msra.mxu1 %v228_v6  ;;  %730 = vmatpush3.msra.mxu0 %v228_v6  ;;  %v225_v9 = vld [vmem:[%s1050_s5 + $0x18] sm:$0xff]  ;;  %v224_v10 = vld [vmem:[%s1050_s5 + $0x10] sm:$0xff]  ;;  %v223_v11 = vld [vmem:[%s1050_s5 + $0x8] sm:$0xff]  ;;  %v819_v31 = vmov 1966171168  }
   0x9   :  { %677 = vmatprep.subr.mxu1 %v817_v2  ;;  %731 = vmatprep.subr.mxu0 %v817_v2  ;;  %v222_v12 = vld [vmem:[%s1050_s5] sm:$0xff]  ;;  %v602_v14 = vld [vmem:[%s1047_s2 + $0x8] sm:$0xff]  ;;  %v245_v15 = vld [vmem:[%s1052_s7 + $0x78] sm:$0xff]  ;;  %v197_v32 = vunpack.c.l.s4 %v819_v31  ;;  %v200_v35 = vshrl.u32 %v199_v33, 7 }
   0xa   :  { %678 = vmatpush3.msra.mxu1 %v227_v7  ;;  %732 = vmatpush3.msra.mxu0 %v227_v7  ;;  %v247_v13 = vld [vmem:[%s1047_s2] sm:$0xff]  ;;  %v244_v16 = vld [vmem:[%s1052_s7 + $0x70] sm:$0xff]  ;;  %v243_v17 = vld [vmem:[%s1052_s7 + $0x68] sm:$0xff] }
   0xb   :  { %679 = vmatprep.subr.mxu1 %v817_v2  ;;  %733 = vmatprep.subr.mxu0 %v817_v2  ;;  %v242_v18 = vld [vmem:[%s1052_s7 + $0x60] sm:$0xff]  ;;  %v241_v19 = vld [vmem:[%s1052_s7 + $0x58] sm:$0xff]  ;;  %v240_v20 = vld [vmem:[%s1052_s7 + $0x50] sm:$0xff]  ;;  %v198_v34 = vunpack.c.0.s8 %v197_v32 }
   0xc   :  { %680 = vmatpush3.msra.mxu1 %v226_v8  ;;  %734 = vmatpush3.msra.mxu0 %v226_v8  ;;  %v239_v21 = vld [vmem:[%s1052_s7 + $0x48] sm:$0xff]  ;;  %v238_v22 = vld [vmem:[%s1052_s7 + $0x40] sm:$0xff]  ;;  %v237_v23 = vld [vmem:[%s1052_s7 + $0x38] sm:$0xff] }
   0xd   :  { %681 = vmatprep.subr.mxu1 %v817_v2  ;;  %735 = vmatprep.subr.mxu0 %v817_v2  ;;  %v236_v24 = vld [vmem:[%s1052_s7 + $0x30] sm:$0xff]  ;;  %v235_v25 = vld [vmem:[%s1052_s7 + $0x28] sm:$0xff]  ;;  %v234_v26 = vld [vmem:[%s1052_s7 + $0x20] sm:$0xff]  ;;  %v201_v40 = vsub.s32 %v198_v34, %v200_v35 }
   0xe   :  { %682 = vmatpush3.msra.mxu1 %v225_v9  ;;  %736 = vmatpush3.msra.mxu0 %v225_v9  ;;  %v233_v27 = vld [vmem:[%s1052_s7 + $0x18] sm:$0xff]  ;;  %v232_v28 = vld [vmem:[%s1052_s7 + $0x10] sm:$0xff]  ;;  %v231_v29 = vld [vmem:[%s1052_s7 + $0x8] sm:$0xff] }
   0xf   :  { %683 = vmatprep.subr.mxu1 %v817_v2  ;;  %737 = vmatprep.subr.mxu0 %v817_v2  ;;  %v230_v30 = vld [vmem:[%s1052_s7] sm:$0xff] }
  0x10   :  { %684 = vmatpush3.msra.mxu1 %v224_v10  ;;  %738 = vmatpush3.msra.mxu0 %v224_v10  ;;  %v596_v38 = vld [vmem:[%s1051_s6] ss:$0 sm:$0xff]  ;;  %s820_s6 = smov [#allocation4]  }
  0x11   :  { %685 = vmatprep.subr.mxu1 %v817_v2  ;;  %739 = vmatprep.subr.mxu0 %v817_v2  ;;  %s581_s7 = sshll.u32 %s820_s6, 4  ;;  %s582_s7 = int_to_ptr.vmem [resolvable:$true] %s581_s7 }
  0x12   :  { %686 = vmatpush3.msra.mxu1 %v223_v11  ;;  %740 = vmatpush3.msra.mxu0 %v223_v11  ;;  %s795_s0 = scalar_lea.vmem %s582_s7, 256  ;;  %p800_p1 = scmp.lt.s32.totalorder %s582_s7, %s582_s7 }
  0x13   :  { %687 = vmatprep.subr.mxu1 %v817_v2  ;;  %741 = vmatprep.subr.mxu0 %v817_v2  ;;  %p796_p0 = scmp.ne.s32.totalorder %s582_s7, %s795_s0  ;;  %p801_p2 = scmp.lt.s32.totalorder %s795_s0, %s795_s0 }
  0x14   :  { %688 = vmatpush3.msra.mxu1 %v222_v12  ;;  %689 = vmatprep.mubr.msk.f32.mxu1 %vm818_vm1, %v817_v2 }
  0x15   :  { %742 = vmatpush3.msra.mxu0 %v222_v12  ;;  %743 = vmatprep.mubr.msk.f32.mxu0 %vm818_vm1, %v817_v2  ;;  %p802_p3 = por %p801_p2, %p800_p1 }
  0x16   :  { %690 = vmatmul.mubr.msk.f32.vlgmr.msra.gmra.mxu1 %vm255_vm2, %v247_v13  ;;  %744 = vmatmul.mubr.msk.f32.vlgmr.msra.gmra.mxu0 %vm255_vm2, %v602_v14 }
  0x17   :  { %692 = vmatprep.subr.mxu1 %v817_v2  ;;  %746 = vmatprep.subr.mxu0 %v817_v2  ;;  %p803_p4 = pnand %p802_p3, %p796_p0 }
  0x18   :  { %693 = vmatpush3.msra.mxu1 %v245_v15  ;;  %747 = vmatpush3.msra.mxu0 %v245_v15 }
  0x19   :  { %694 = vmatprep.subr.mxu1 %v817_v2  ;;  %748 = vmatprep.subr.mxu0 %v817_v2 }
  0x1a   :  { %695 = vmatpush3.msra.mxu1 %v244_v16  ;;  %749 = vmatpush3.msra.mxu0 %v244_v16 }
  0x1b   :  { %696 = vmatprep.subr.mxu1 %v817_v2  ;;  %750 = vmatprep.subr.mxu0 %v817_v2 }
  0x1c   :  { %697 = vmatpush3.msra.mxu1 %v243_v17  ;;  %751 = vmatpush3.msra.mxu0 %v243_v17 }
  0x1d   :  { %698 = vmatprep.subr.mxu1 %v817_v2  ;;  %752 = vmatprep.subr.mxu0 %v817_v2 }
  0x1e   :  { %699 = vmatpush3.msra.mxu1 %v242_v18  ;;  %753 = vmatpush3.msra.mxu0 %v242_v18 }
  0x1f   :  { %700 = vmatprep.subr.mxu1 %v817_v2  ;;  %754 = vmatprep.subr.mxu0 %v817_v2 }
  0x20   :  { %701 = vmatpush3.msra.mxu1 %v241_v19  ;;  %755 = vmatpush3.msra.mxu0 %v241_v19 }
  0x21   :  { %702 = vmatprep.subr.mxu1 %v817_v2  ;;  %756 = vmatprep.subr.mxu0 %v817_v2 }
  0x22   :  { %724 = vmatprep.mubr.msk.f32.mxu1 %vm818_vm1, %v817_v2  ;;  %778 = vmatprep.mubr.msk.f32.mxu0 %vm818_vm1, %v817_v2 }
  0x23   :  { %703 = vmatpush3.msra.mxu1 %v240_v20  ;;  %757 = vmatpush3.msra.mxu0 %v240_v20 }
  0x24   :  { %704 = vmatprep.subr.mxu1 %v817_v2  ;;  %758 = vmatprep.subr.mxu0 %v817_v2 }
  0x25   :  { %705 = vmatpush3.msra.mxu1 %v239_v21  ;;  %759 = vmatpush3.msra.mxu0 %v239_v21 }
  0x26   :  { %706 = vmatprep.subr.mxu1 %v817_v2  ;;  %760 = vmatprep.subr.mxu0 %v817_v2 }
  0x27   :  { %707 = vmatpush3.msra.mxu1 %v238_v22  ;;  %761 = vmatpush3.msra.mxu0 %v238_v22 }
  0x28   :  { %708 = vmatprep.subr.mxu1 %v817_v2  ;;  %762 = vmatprep.subr.mxu0 %v817_v2 }
  0x29   :  { %709 = vmatpush3.msra.mxu1 %v237_v23  ;;  %763 = vmatpush3.msra.mxu0 %v237_v23 }
  0x2a   :  { %710 = vmatprep.subr.mxu1 %v817_v2  ;;  %764 = vmatprep.subr.mxu0 %v817_v2 }
  0x2b   :  { %711 = vmatpush3.msra.mxu1 %v236_v24  ;;  %765 = vmatpush3.msra.mxu0 %v236_v24 }
  0x2c   :  { %712 = vmatprep.subr.mxu1 %v817_v2  ;;  %766 = vmatprep.subr.mxu0 %v817_v2 }
  0x2d   :  { %713 = vmatpush3.msra.mxu1 %v235_v25  ;;  %767 = vmatpush3.msra.mxu0 %v235_v25 }
  0x2e   :  { %714 = vmatprep.subr.mxu1 %v817_v2  ;;  %768 = vmatprep.subr.mxu0 %v817_v2 }
  0x2f   :  { %715 = vmatpush3.msra.mxu1 %v234_v26  ;;  %769 = vmatpush3.msra.mxu0 %v234_v26 }
  0x30   :  { %716 = vmatprep.subr.mxu1 %v817_v2  ;;  %770 = vmatprep.subr.mxu0 %v817_v2 }
  0x31   :  { %717 = vmatpush3.msra.mxu1 %v233_v27  ;;  %771 = vmatpush3.msra.mxu0 %v233_v27 }
  0x32   :  { %718 = vmatprep.subr.mxu1 %v817_v2  ;;  %772 = vmatprep.subr.mxu0 %v817_v2 }
  0x33   :  { %719 = vmatpush3.msra.mxu1 %v232_v28  ;;  %773 = vmatpush3.msra.mxu0 %v232_v28 }
  0x34   :  { %720 = vmatprep.subr.mxu1 %v817_v2  ;;  %774 = vmatprep.subr.mxu0 %v817_v2 }
  0x35   :  { %721 = vmatpush3.msra.mxu1 %v231_v29  ;;  %775 = vmatpush3.msra.mxu0 %v231_v29 }
  0x36   :  { %722 = vmatprep.subr.mxu1 %v817_v2  ;;  %776 = vmatprep.subr.mxu0 %v817_v2 }
  0x37   :  { %723 = vmatpush3.msra.mxu1 %v230_v30  ;;  %777 = vmatpush3.msra.mxu0 %v230_v30 }
  0xc4   :  { %v110_v36 = vpop.f32.mrf.mxu0 }
  0xc5   :  { %v183_v37 = vpop.f32.mrf.mxu1 }
  0xc6   :  { %v184_v39 = vadd.f32 %v183_v37, %v110_v36  ;;  %v667_v41 = vpop.f32.mrf.mxu0 }
  0xc7   :  { %v672_v42 = vpop.f32.mrf.mxu1 }
  0xc8   :  { %v194_v43 = vadd.f32 %v596_v38, %v184_v39 }
  0xca   :  { %v202_v44 = vrot.slane %v194_v43, %v201_v40 }
  0xcc   :  { %v203_v45 = vcombine.high %v202_v44, %v202_v44  ;;  %597 = vst.sshfl [vmem:[#allocation2] sm:$0x1 pattern:$0x73625140] %v202_v44 }
  0xce   :  { %598 = vst.sshfl [vmem:[#allocation2 + $0x1] sm:$0x1 pattern:$0x73625140] %v203_v45 }
  0xd3   :  { %v599_v47 = vld [vmem:[#allocation2] ss:$0 sm:$0xff] }
  0xd5   :  { %v603_v46 = vld [vmem:[#allocation2 + $0x1] ss:$0 sm:$0xff] }
  0xd6   :  { %v325_v48 = vpop.f32.mrf.mxu1  ;;  %v489_v49 = vpop.f32.mrf.mxu0 }
  0xd7   :  { %v326_v50 = vadd.f32 %v599_v47, %v325_v48  ;;  %v490_v51 = vadd.f32 %v603_v46, %v489_v49 }
  0xd8   :  { %v691_v52 = vpop.f32.mrf.mxu1  ;;  %v745_v53 = vpop.f32.mrf.mxu0 }
  0xd9   :  { %v329_v54 = vmax.f32 %v326_v50, 0.0  ;;  %v493_v55 = vmax.f32 %v490_v51, 0.0 }
  0xdb   :  { %330 = vst [vmem:[#allocation4] sm:$0xff] %v329_v54  ;;  %495 = vst [vmem:[#allocation4 + $0x8] sm:$0xff] %v493_v55  ;;  %725 = vmatmul.mubr.f32.vlgmr.msra.gmra.mxu1 %v329_v54  ;;  %779 = vmatmul.mubr.f32.vlgmr.msra.gmra.mxu0 %v493_v55 }
  0xdc   :  { %806 = shalt.err (!%p803_p4)
}
  0xdd   :  { %s821_s1 = smov 128   ;;  %s822_s21 = smov 8   ;;  %v331_v56 = vstv %s1053_s8  ;;  %vm408_vm3 = vcmask 31744  }
  0xde   :  { %587 = dma.vmem_to_hbm [thread:$0]  %s582_s7, 256, %s1055_s10, [#allocation5], %s821_s1, %s821_s1, %s822_s21  }
 0x19b   :  { %v398_v57 = vpop.f32.mrf.mxu1  ;;  %v562_v58 = vpop.f32.mrf.mxu0 }
 0x19c   :  { %v399_v59 = vadd.f32 %v398_v57, %v331_v56  ;;  %v563_v60 = vadd.f32 %v562_v58, %v331_v56 }
 0x19d   :  { %v726_v61 = vpop.f32.mrf.mxu1  ;;  %v780_v62 = vpop.f32.mrf.mxu0 }
 0x19e   :  { %v601_v63 = vmul.f32 -1.442695, %v399_v59  ;;  %v605_v0 = vmul.f32 -1.442695, %v563_v60 }
 0x1a0   :  { %787 = vpow2.f32 %v601_v63 }
 0x1a1   :  { %789 = vpow2.f32 %v605_v0 }
 0x1ad   :  { %v788_v1 = vpop.eup %787 }
 0x1ae   :  { %v790_v2 = vpop.eup %789  ;;  %v405_v3 = vadd.f32 1.0, %v788_v1 }
 0x1af   :  { %v569_v4 = vadd.f32 1.0, %v790_v2 }
 0x1b0   :  { %791 = vrcp.f32 %v405_v3 }
 0x1b1   :  { %793 = vrcp.f32 %v569_v4 }
 0x1bd   :  { %v792_v5 = vpop.eup %791 }
 0x1be   :  { %v794_v6 = vpop.eup %793  ;;  %409 = vst.msk [vmem:[%s1054_s9] sm:$0xff] %vm408_vm3, %v792_v5 }
 0x1bf   :  { %606 = vst.msk [vmem:[%s1054_s9 + $0x8] sm:$0xff] %vm408_vm3, %v794_v6 }
 0x1c0   :  { %815 = dma.done.wait [#allocation5], 256  }
 0x1c1   :  { %816 = vsyncadd [#allocation5], 4294967040 }
 0x1c2   :  { %593 = vsyncpa [#allocation5], 1 }

</bundles_post_ra>
